<compile_context>
chip_gen: v6e
topology: v6e:2x2x1
jax: 0.10.0
libtpu: 0.0.40
codegen_flags: <defaults>
</compile_context>

<pallas_src>
import math

import jax
import jax.numpy as jnp
from jax.experimental import pallas as pl
from jax.experimental.pallas import tpu as pltpu


VMEM_LIMIT = 32 * 1024 * 1024  # safe scoped-VMEM limit on v5e/v6e/v7x

# Set to jnp.bfloat16 on v6e/v7x for ~2x MXU throughput and half the DMA bytes.
# Only matmul operands are cast; accumulation and all elementwise/VPU math stay
# f32 (required on v5e). The test below assumes f32 (loosen tolerances ~1e-2
# if you flip this).
MXU_DTYPE = jnp.float32


def _round_up(x, m):
    return (x + m - 1) // m * m


def _row_tile(M, B, target=1024):
    """Row tile for the flattened (S*B, D) forwardnet input.

    Must be a multiple of B (so in-kernel z replication lines up with the
    s-major / b-minor row order) and of 8 (sublane alignment) unless it covers
    all rows; aims for >= 2 grid steps on larger problems (v7x megacore).
    """
    step = B * 8 // math.gcd(B, 8)          # lcm(B, 8)
    if M <= 2 * step:
        return M                            # tiny problem: one full-row tile
    half = _round_up((M + 1) // 2, step)
    return max(step, min(target, half))


def _batch_tile(B, target=256):
    """Batch tile (full batch when small, else multiple of 8, >=2 steps)."""
    if B <= 16:
        return B
    return max(8, min(target, _round_up((B + 1) // 2, 8)))


def _attend_batch_tile(B, S, D, itemsize):
    """Batch tile for attend: keep the (S, tb, D) hc block inside VMEM."""
    tb = _batch_tile(B)
    cap = max(1, (VMEM_LIMIT // 4) // max(1, 2 * S * D * itemsize))
    if tb > cap:
        tb = max(8, cap // 8 * 8)
    return B if tb >= B else tb


def _replicate_rows(z, reps):
    """Replicate a (B, D) value `reps` times along rows, VMEM-only.

    Uses only axis-0 concatenation (always supported by Mosaic) + a static
    slice, O(log reps) ops, so z_ep never exists in HBM.
    """
    b = z.shape[0]
    out = z
    have = 1
    while have < reps:
        out = jnp.concatenate([out, out], axis=0)
        have *= 2
    if have > reps:
        out = out[: reps * b, :]
    return out


# --------------------------------------------------------------------------
# ForwardNet logits:  o = relu([hc, z, hc*z] @ Wh^T + bh) @ Wo^T + bo
# (hc flattened to (S*B, D) rows; z broadcast in VMEM, never in HBM)
# --------------------------------------------------------------------------
def forwardnet_kernel(hc_ref, z_ref, whc_ref, whz_ref, whp_ref, bh_ref,
                      wo_ref, bo_ref, o_ref):
    tm = hc_ref.shape[0]
    b = z_ref.shape[0]
    hc = hc_ref[...]                                   # (tm, D)
    zt = _replicate_rows(z_ref[...], tm // b)          # (tm, D), VMEM only
    # elementwise product in f32 (v5e-safe), cast back for the MXU
    prod = (hc.astype(jnp.float32) * zt.astype(jnp.float32)).astype(hc.dtype)
    h = jnp.dot(hc, whc_ref[...], preferred_element_type=jnp.float32)
    h = h + jnp.dot(zt, whz_ref[...], preferred_element_type=jnp.float32)
    h = h + jnp.dot(prod, whp_ref[...], preferred_element_type=jnp.float32)
    h = jnp.maximum(h + bh_ref[...], 0.0)              # (tm, H) ReLU
    # N=1 output projection on the VPU (mul + lane reduce), MXU slot stays free
    logit = jnp.sum(h * wo_ref[...], axis=-1, keepdims=True) + bo_ref[...]
    o_ref[...] = logit.astype(o_ref.dtype)             # (tm, 1)


def forwardnet_logits(hc2d, z, w_h, b_h, w_o, b_o, *, tm):
    """hc2d: (M, D) s-major/b-minor rows; z: (B, D); w_h: (H, 3D); w_o: (1, H)."""
    M, D = hc2d.shape
    B = z.shape[0]
    H = w_h.shape[0]
    # Split the hidden weight so the kernel never needs a (., 3D) concat.
    whc = w_h[:, :D].T.astype(MXU_DTYPE)               # (D, H)
    whz = w_h[:, D:2 * D].T.astype(MXU_DTYPE)          # (D, H)
    whp = w_h[:, 2 * D:].T.astype(MXU_DTYPE)           # (D, H)
    bh = b_h.reshape(1, H).astype(jnp.float32)
    wo = w_o.reshape(1, H).astype(jnp.float32)
    bo = b_o.reshape(1, 1).astype(jnp.float32)

    nt = pl.cdiv(M, tm)
    Mp = nt * tm                                       # no jnp.pad: tail block
                                                       # rows are garbage and
                                                       # sliced off by caller
    out = pl.pallas_call(
        forwardnet_kernel,
        out_shape=jax.ShapeDtypeStruct((Mp, 1), jnp.float32),
        grid_spec=pltpu.PrefetchScalarGridSpec(
            num_scalar_prefetch=0,
            grid=(nt,),
            in_specs=[
                pl.BlockSpec((tm, D), lambda i: (i, 0)),   # hc rows
                pl.BlockSpec((B, D), lambda i: (0, 0)),    # z (resident)
                pl.BlockSpec((D, H), lambda i: (0, 0)),    # Wh[:, :D]^T
                pl.BlockSpec((D, H), lambda i: (0, 0)),    # Wh[:, D:2D]^T
                pl.BlockSpec((D, H), lambda i: (0, 0)),    # Wh[:, 2D:]^T
                pl.BlockSpec((1, H), lambda i: (0, 0)),    # bh
                pl.BlockSpec((1, H), lambda i: (0, 0)),    # Wo row
                pl.BlockSpec((1, 1), lambda i: (0, 0)),    # bo
            ],
            out_specs=pl.BlockSpec((tm, 1), lambda i: (i, 0)),
        ),
        compiler_params=pltpu.CompilerParams(
            dimension_semantics=("parallel",),
            vmem_limit_bytes=VMEM_LIMIT),
        cost_estimate=pl.CostEstimate(
            flops=2 * Mp * H * 3 * D,
            transcendentals=0,
            bytes_accessed=(Mp * D + B * D + 3 * D * H + 3 * H + Mp) * 4),
    )(hc2d, z, whc, whz, whp, bh, wo, bo)
    return out                                          # (Mp, 1)


# --------------------------------------------------------------------------
# Masked softmax over seq + weighted sum over hc, a batch *tile* per grid step
# (hc stays in native (S, B, D) layout -> no HBM transpose)
# --------------------------------------------------------------------------
def attend_kernel(logit_ref, mask_ref, hc_ref, p_ref, u_ref):
    logit = logit_ref[...].astype(jnp.float32)          # (tb, S)
    m = mask_ref[...].astype(jnp.float32)                # (tb, S)
    x = logit * m
    e = jnp.exp(x - jnp.max(x, axis=-1, keepdims=True)) * m
    denom = jnp.sum(e, axis=-1, keepdims=True) + 1e-6
    inv = pl.reciprocal(denom, approx=True)              # EUP slot
    inv = inv * (2.0 - denom * inv)                      # 1 Newton step -> ~f32 exact
    p = e * inv
    p_ref[...] = p.astype(p_ref.dtype)

    hc = hc_ref[...]                                     # (S, tb, D)
    tb = p.shape[0]
    rows = []
    for j in range(tb):                                  # tb is static; "tb small dots"
        hc_j = jax.lax.index_in_dim(hc, j, axis=1, keepdims=False)   # (S, D)
        rows.append(jnp.dot(p[j:j + 1, :].astype(hc_j.dtype), hc_j,
                            preferred_element_type=jnp.float32))      # (1, D)
    u_ref[...] = jnp.concatenate(rows, axis=0).astype(u_ref.dtype)    # (tb, D)


def attend(logits_bs, mask, hc, *, tb):
    """logits_bs/mask: (B, S); hc: (S, B, D) -> (p: (B, S), u: (B, D))."""
    S, B, D = hc.shape
    nt = pl.cdiv(B, tb)
    Bp = nt * tb
    p, u = pl.pallas_call(
        attend_kernel,
        out_shape=(jax.ShapeDtypeStruct((Bp, S), jnp.float32),
                   jax.ShapeDtypeStruct((Bp, D), jnp.float32)),
        grid_spec=pltpu.PrefetchScalarGridSpec(
            num_scalar_prefetch=0,
            grid=(nt,),
            in_specs=[
                pl.BlockSpec((tb, S), lambda b: (b, 0)),
                pl.BlockSpec((tb, S), lambda b: (b, 0)),
                pl.BlockSpec((S, tb, D), lambda b: (0, b, 0)),
            ],
            out_specs=[
                pl.BlockSpec((tb, S), lambda b: (b, 0)),
                pl.BlockSpec((tb, D), lambda b: (b, 0)),
            ],
        ),
        compiler_params=pltpu.CompilerParams(
            dimension_semantics=("parallel",),
            vmem_limit_bytes=VMEM_LIMIT),
    )(logits_bs, mask, hc)
    return p[:B], u[:B]


# --------------------------------------------------------------------------
# SFU:  m = cat(z, u); o = sigmoid(Wg m) * tanh(Wr m) + (1 - sigmoid(Wg m)) * z
# (r and g stacked along the output dim -> 2 fused dots instead of 4)
# --------------------------------------------------------------------------
def sfu_kernel(z_ref, u_ref, wz_ref, wu_ref, b_ref, o_ref):
    D = z_ref.shape[-1]
    z = z_ref[...]
    u = u_ref[...]
    rg = jnp.dot(z, wz_ref[...], preferred_element_type=jnp.float32)
    rg = rg + jnp.dot(u, wu_ref[...], preferred_element_type=jnp.float32)
    rg = rg + b_ref[...]                                 # (tb, 2D) = [r_pre | g_pre]
    r = jnp.tanh(rg[:, :D])
    g = jax.nn.sigmoid(rg[:, D:])
    o_ref[...] = (g * r + (1.0 - g) * z.astype(jnp.float32)).astype(o_ref.dtype)


def sfu(z, u, prm, *, tb):
    """z/u: (B, D); prm: dict with w_r (D,2D), b_r (D,), w_g (D,2D), b_g (D,)."""
    B, D = z.shape
    wz = jnp.concatenate([prm["w_r"][:, :D].T, prm["w_g"][:, :D].T],
                         axis=1).astype(MXU_DTYPE)        # (D, 2D)
    wu = jnp.concatenate([prm["w_r"][:, D:].T, prm["w_g"][:, D:].T],
                         axis=1).astype(MXU_DTYPE)        # (D, 2D)
    b = jnp.concatenate([prm["b_r"], prm["b_g"]]).reshape(1, 2 * D)
    b = b.astype(jnp.float32)

    nt = pl.cdiv(B, tb)
    Bp = nt * tb
    out = pl.pallas_call(
        sfu_kernel,
        out_shape=jax.ShapeDtypeStruct((Bp, D), jnp.float32),
        grid_spec=pltpu.PrefetchScalarGridSpec(
            num_scalar_prefetch=0,
            grid=(nt,),
            in_specs=[
                pl.BlockSpec((tb, D), lambda i: (i, 0)),
                pl.BlockSpec((tb, D), lambda i: (i, 0)),
                pl.BlockSpec((D, 2 * D), lambda i: (0, 0)),
                pl.BlockSpec((D, 2 * D), lambda i: (0, 0)),
                pl.BlockSpec((1, 2 * D), lambda i: (0, 0)),
            ],
            out_specs=pl.BlockSpec((tb, D), lambda i: (i, 0)),
        ),
        compiler_params=pltpu.CompilerParams(
            dimension_semantics=("parallel",),
            vmem_limit_bytes=VMEM_LIMIT),
    )(z.astype(MXU_DTYPE), u.astype(MXU_DTYPE), wz, wu, b)
    return out[:B]


# --------------------------------------------------------------------------
# Full MemPtrNet forward
# --------------------------------------------------------------------------
def mem_ptr_net(hc, hc_mask, zs, params):
    """hc: (S, B, D); hc_mask: (B, S); zs: (B, D) -> (ans (2,B,S), zs_new (B,D))."""
    S, B, D = hc.shape
    M = S * B
    itemsize = jnp.dtype(MXU_DTYPE).itemsize
    hc_m = hc.astype(MXU_DTYPE)
    hc2d = hc_m.reshape(M, D)                    # free reshape (contiguous)
    mask_f = hc_mask.astype(jnp.float32)
    tm = _row_tile(M, B)
    tb = _attend_batch_tile(B, S, D, itemsize)
    tb_sfu = _batch_tile(B)

    def pointer_step(z, net):
        logit_col = forwardnet_logits(hc2d, z.astype(MXU_DTYPE),
                                      net["w_h"], net["b_h"],
                                      net["w_o"], net["b_o"], tm=tm)
        # only tiny (S*B)-element glue in XLA (hc itself is never transposed)
        logits_bs = logit_col[:M, 0].reshape(S, B).T          # (B, S)
        return attend(logits_bs, mask_f, hc_m, tb=tb)

    start_p, us = pointer_step(zs, params["start_net"])
    ze = sfu(zs, us, params["start_sfu"], tb=tb_sfu)
    end_p, ue = pointer_step(ze, params["end_net"])
    zs_new = sfu(ze, ue, params["end_sfu"], tb=tb_sfu)

    ans = jnp.stack([start_p, end_p], axis=0)                  # (2, B, S)
    ans = jnp.where((hc_mask != 0)[None, :, :], ans, jnp.float32(1e-6))
    return ans, zs_new


# --------------------------------------------------------------------------
# Pure-JAX reference (mirrors the PyTorch module in eval mode)
# --------------------------------------------------------------------------
def mem_ptr_net_ref(hc, hc_mask, zs, params):
    S, B, D = hc.shape
    m = hc_mask.astype(jnp.float32)

    def masked_softmax(x):
        x = x * m
        e = jnp.exp(x - jnp.max(x, axis=-1, keepdims=True)) * m
        return e / (jnp.sum(e, axis=-1, keepdims=True) + 1e-6)

    def forward_net(x, net):
        h = jax.nn.relu(x @ net["w_h"].T + net["b_h"])
        o = h @ net["w_o"].T + net["b_o"]           # (S, B, 1)
        return masked_softmax(jnp.transpose(o[..., 0], (1, 0)))

    def sfu_ref(z, u, p):
        mm = jnp.concatenate([z, u], axis=-1)
        r = jnp.tanh(mm @ p["w_r"].T + p["b_r"])
        g = jax.nn.sigmoid(mm @ p["w_g"].T + p["b_g"])
        return g * r + (1.0 - g) * z

    zs_ep = jnp.broadcast_to(zs[None], (S, B, D))
    x = jnp.concatenate([hc, zs_ep, hc * zs_ep], axis=-1)
    start_p = forward_net(x, params["start_net"])
    us = jnp.einsum("bs,sbd->bd", start_p, hc)
    ze = sfu_ref(zs, us, params["start_sfu"])
    ze_ep = jnp.broadcast_to(ze[None], (S, B, D))
    x = jnp.concatenate([hc, ze_ep, hc * ze_ep], axis=-1)
    end_p = forward_net(x, params["end_net"])
    ue = jnp.einsum("bs,sbd->bd", end_p, hc)
    zs_new = sfu_ref(ze, ue, params["end_sfu"])
    ans = jnp.stack([start_p, end_p], axis=0)
    ans = jnp.where((hc_mask != 0)[None], ans, jnp.float32(1e-6))
    return ans, zs_new


if __name__ == "__main__":
    S, B, D, H = 8, 2, 32, 32          # seq_len, batch, input_size, hidden_size
    key = jax.random.PRNGKey(0)
    keys = jax.random.split(key, 11)

    def linear_params(k, out_f, in_f):
        kw, kb = jax.random.split(k)
        bound = 1.0 / jnp.sqrt(jnp.float32(in_f))
        w = jax.random.uniform(kw, (out_f, in_f), minval=-bound, maxval=bound,
                               dtype=jnp.float32)
        b = jax.random.uniform(kb, (out_f,), minval=-bound, maxval=bound,
                               dtype=jnp.float32)
        return w, b

    def forward_net_params(k):
        k1, k2 = jax.random.split(k)
        w_h, b_h = linear_params(k1, H, 3 * D)
        w_o, b_o = linear_params(k2, 1, H)
        return {"w_h": w_h, "b_h": b_h, "w_o": w_o, "b_o": b_o}

    def sfu_params(k):
        k1, k2 = jax.random.split(k)
        w_r, b_r = linear_params(k1, D, 2 * D)
        w_g, b_g = linear_params(k2, D, 2 * D)
        return {"w_r": w_r, "b_r": b_r, "w_g": w_g, "b_g": b_g}

    params = {
        "start_net": forward_net_params(keys[0]),
        "start_sfu": sfu_params(keys[1]),
        "end_net": forward_net_params(keys[2]),
        "end_sfu": sfu_params(keys[3]),
    }

    hc = jax.random.normal(keys[4], (S, B, D), dtype=jnp.float32)
    zs = jax.random.normal(keys[5], (B, D), dtype=jnp.float32)
    lengths = jnp.array([6, 8], dtype=jnp.int32)
    hc_mask = (jnp.arange(S)[None, :] < lengths[:, None]).astype(jnp.float32)

    ans_out, zs_new = mem_ptr_net(hc, hc_mask, zs, params)
    ans_out = jax.block_until_ready(ans_out)
    zs_new = jax.block_until_ready(zs_new)

    ans_ref, zs_ref = mem_ptr_net_ref(hc, hc_mask, zs, params)
    assert ans_out.shape == (2, B, S)
    assert zs_new.shape == (B, D)
    # Tolerance 1e-3: the softmax uses the EUP approximate reciprocal + one
    # Newton step (exact-division variant matches to <1e-5).
    assert jnp.allclose(ans_out, ans_ref, atol=1e-3, rtol=1e-3), "ans mismatch"
    assert jnp.allclose(zs_new, zs_ref, atol=1e-3, rtol=1e-3), "zs_new mismatch"

    print("KERNEL_OK")
</pallas_src>

<mosaic_0001>
module attributes {stable_mosaic.version = 11 : i64} {
  func.func @forwardnet_kernel(%arg0: i32, %arg1: memref<16x32xf32, #tpu.memory_space<vmem>>, %arg2: memref<2x32xf32, #tpu.memory_space<vmem>>, %arg3: memref<32x32xf32, #tpu.memory_space<vmem>>, %arg4: memref<32x32xf32, #tpu.memory_space<vmem>>, %arg5: memref<32x32xf32, #tpu.memory_space<vmem>>, %arg6: memref<1x32xf32, #tpu.memory_space<vmem>>, %arg7: memref<1x32xf32, #tpu.memory_space<vmem>>, %arg8: memref<1x1xf32, #tpu.memory_space<vmem>>, %arg9: memref<16x1xf32, #tpu.memory_space<vmem>>) attributes {dimension_semantics = [#tpu.dimension_semantics<parallel>], iteration_bounds = array<i64: 1>, scalar_prefetch = 0 : i64, scratch_operands = 0 : i64, tpu.core_type = #tpu.core_type<tc>, window_params = [{transform_indices = @transform_0, window_bounds = array<i64: 16, 32>}, {pipeline_mode = #tpu.pipeline_mode<synchronous>, transform_indices = @transform_1, window_bounds = array<i64: 2, 32>}, {pipeline_mode = #tpu.pipeline_mode<synchronous>, transform_indices = @transform_2, window_bounds = array<i64: 32, 32>}, {pipeline_mode = #tpu.pipeline_mode<synchronous>, transform_indices = @transform_3, window_bounds = array<i64: 32, 32>}, {pipeline_mode = #tpu.pipeline_mode<synchronous>, transform_indices = @transform_4, window_bounds = array<i64: 32, 32>}, {pipeline_mode = #tpu.pipeline_mode<synchronous>, transform_indices = @transform_5, window_bounds = array<i64: 1, 32>}, {pipeline_mode = #tpu.pipeline_mode<synchronous>, transform_indices = @transform_6, window_bounds = array<i64: 1, 32>}, {pipeline_mode = #tpu.pipeline_mode<synchronous>, transform_indices = @transform_7, window_bounds = array<i64: 1, 1>}, {transform_indices = @transform_8, window_bounds = array<i64: 16, 1>}]} {
    %c0 = arith.constant 0 : index
    %c0_0 = arith.constant 0 : index
    %0 = vector.load %arg1[%c0, %c0_0] : memref<16x32xf32, #tpu.memory_space<vmem>>, vector<16x32xf32>
    %c0_1 = arith.constant 0 : index
    %c0_2 = arith.constant 0 : index
    %1 = vector.load %arg2[%c0_1, %c0_2] : memref<2x32xf32, #tpu.memory_space<vmem>>, vector<2x32xf32>
    %2 = tpu.concatenate %1, %1 in 0 : vector<2x32xf32>, vector<2x32xf32> -> vector<4x32xf32>
    %3 = tpu.concatenate %2, %2 in 0 : vector<4x32xf32>, vector<4x32xf32> -> vector<8x32xf32>
    %4 = tpu.concatenate %3, %3 in 0 : vector<8x32xf32>, vector<8x32xf32> -> vector<16x32xf32>
    %5 = arith.mulf %0, %4 : vector<16x32xf32>
    %c0_3 = arith.constant 0 : index
    %c0_4 = arith.constant 0 : index
    %6 = vector.load %arg3[%c0_3, %c0_4] : memref<32x32xf32, #tpu.memory_space<vmem>>, vector<32x32xf32>
    %cst = arith.constant dense<0.000000e+00> : vector<16x32xf32>
    %7 = tpu.matmul %0, %6, %cst {dimension_numbers = #tpu.dot_dimension_numbers<[1], [0], [0], [1], [0, 0, 1, 1], [], []>} : vector<16x32xf32>, vector<32x32xf32>, vector<16x32xf32> -> vector<16x32xf32>
    %c0_5 = arith.constant 0 : index
    %c0_6 = arith.constant 0 : index
    %8 = vector.load %arg4[%c0_5, %c0_6] : memref<32x32xf32, #tpu.memory_space<vmem>>, vector<32x32xf32>
    %cst_7 = arith.constant dense<0.000000e+00> : vector<16x32xf32>
    %9 = tpu.matmul %4, %8, %cst_7 {dimension_numbers = #tpu.dot_dimension_numbers<[1], [0], [0], [1], [0, 0, 1, 1], [], []>} : vector<16x32xf32>, vector<32x32xf32>, vector<16x32xf32> -> vector<16x32xf32>
    %10 = arith.addf %7, %9 : vector<16x32xf32>
    %c0_8 = arith.constant 0 : index
    %c0_9 = arith.constant 0 : index
    %11 = vector.load %arg5[%c0_8, %c0_9] : memref<32x32xf32, #tpu.memory_space<vmem>>, vector<32x32xf32>
    %cst_10 = arith.constant dense<0.000000e+00> : vector<16x32xf32>
    %12 = tpu.matmul %5, %11, %cst_10 {dimension_numbers = #tpu.dot_dimension_numbers<[1], [0], [0], [1], [0, 0, 1, 1], [], []>} : vector<16x32xf32>, vector<32x32xf32>, vector<16x32xf32> -> vector<16x32xf32>
    %13 = arith.addf %10, %12 : vector<16x32xf32>
    %c0_11 = arith.constant 0 : index
    %c0_12 = arith.constant 0 : index
    %14 = vector.load %arg6[%c0_11, %c0_12] : memref<1x32xf32, #tpu.memory_space<vmem>>, vector<1x32xf32>
    %15 = vector.broadcast %14 : vector<1x32xf32> to vector<16x32xf32>
    %16 = arith.addf %13, %15 : vector<16x32xf32>
    %cst_13 = arith.constant 0.000000e+00 : f32
    %17 = vector.broadcast %cst_13 : f32 to vector<16x32xf32>
    %18 = arith.maximumf %16, %17 : vector<16x32xf32>
    %c0_14 = arith.constant 0 : index
    %c0_15 = arith.constant 0 : index
    %19 = vector.load %arg7[%c0_14, %c0_15] : memref<1x32xf32, #tpu.memory_space<vmem>>, vector<1x32xf32>
    %20 = vector.broadcast %19 : vector<1x32xf32> to vector<16x32xf32>
    %21 = arith.mulf %18, %20 : vector<16x32xf32>
    %cst_16 = arith.constant dense<0.000000e+00> : vector<16xf32>
    %22 = vector.multi_reduction <add>, %21, %cst_16 [1] : vector<16x32xf32> to vector<16xf32>
    %23 = vector.shape_cast %22 : vector<16xf32> to vector<16x1xf32>
    %c0_17 = arith.constant 0 : index
    %c0_18 = arith.constant 0 : index
    %24 = vector.load %arg8[%c0_17, %c0_18] : memref<1x1xf32, #tpu.memory_space<vmem>>, vector<1x1xf32>
    %25 = vector.broadcast %24 : vector<1x1xf32> to vector<16x1xf32>
    %26 = arith.addf %23, %25 : vector<16x1xf32>
    %c0_19 = arith.constant 0 : index
    %c0_20 = arith.constant 0 : index
    %27 = vector.load %arg9[%c0_19, %c0_20] : memref<16x1xf32, #tpu.memory_space<vmem>>, vector<16x1xf32>
    tpu.vector_store %arg9[%c0_19, %c0_20], %26 {strides = array<i32>} : memref<16x1xf32, #tpu.memory_space<vmem>>, vector<16x1xf32>,
    return
  }
  func.func @transform_0(%arg0: i32) -> (i32, i32) {
    %c0_i32 = arith.constant 0 : i32
    %c0_i32_0 = arith.constant 0 : i32
    return %arg0, %c0_i32 : i32, i32
  }
  func.func @transform_1(%arg0: i32) -> (i32, i32) {
    %c0_i32 = arith.constant 0 : i32
    %c0_i32_0 = arith.constant 0 : i32
    %c0_i32_1 = arith.constant 0 : i32
    return %c0_i32, %c0_i32_0 : i32, i32
  }
  func.func @transform_2(%arg0: i32) -> (i32, i32) {
    %c0_i32 = arith.constant 0 : i32
    %c0_i32_0 = arith.constant 0 : i32
    %c0_i32_1 = arith.constant 0 : i32
    return %c0_i32, %c0_i32_0 : i32, i32
  }
  func.func @transform_3(%arg0: i32) -> (i32, i32) {
    %c0_i32 = arith.constant 0 : i32
    %c0_i32_0 = arith.constant 0 : i32
    %c0_i32_1 = arith.constant 0 : i32
    return %c0_i32, %c0_i32_0 : i32, i32
  }
  func.func @transform_4(%arg0: i32) -> (i32, i32) {
    %c0_i32 = arith.constant 0 : i32
    %c0_i32_0 = arith.constant 0 : i32
    %c0_i32_1 = arith.constant 0 : i32
    return %c0_i32, %c0_i32_0 : i32, i32
  }
  func.func @transform_5(%arg0: i32) -> (i32, i32) {
    %c0_i32 = arith.constant 0 : i32
    %c0_i32_0 = arith.constant 0 : i32
    %c0_i32_1 = arith.constant 0 : i32
    return %c0_i32, %c0_i32_0 : i32, i32
  }
  func.func @transform_6(%arg0: i32) -> (i32, i32) {
    %c0_i32 = arith.constant 0 : i32
    %c0_i32_0 = arith.constant 0 : i32
    %c0_i32_1 = arith.constant 0 : i32
    return %c0_i32, %c0_i32_0 : i32, i32
  }
  func.func @transform_7(%arg0: i32) -> (i32, i32) {
    %c0_i32 = arith.constant 0 : i32
    %c0_i32_0 = arith.constant 0 : i32
    %c0_i32_1 = arith.constant 0 : i32
    return %c0_i32, %c0_i32_0 : i32, i32
  }
  func.func @transform_8(%arg0: i32) -> (i32, i32) {
    %c0_i32 = arith.constant 0 : i32
    %c0_i32_0 = arith.constant 0 : i32
    return %arg0, %c0_i32 : i32, i32
  }
}

</mosaic_0001>

<bundles_post_ra>
// kernel: tpu_custom_call.1
= control target key start
LH: loop header
LB: loop body
LE: loop exit
PB: predicated region body
PF: predicated region fallthrough
CT: control target
= control target key end

     0   :  { %s654_s0 = inlined_call_operand.hbm [shape: f32[16,32], index: 0, kind: input, shape index: {}]   ;;  %s655_s1 = inlined_call_operand.vmem [shape: f32[2,32], index: 1, kind: input, shape index: {}]   ;;  %s656_s2 = inlined_call_operand.hbm [shape: f32[32,32], index: 2, kind: input, shape index: {}]   ;;  %s657_s3 = inlined_call_operand.hbm [shape: f32[32,32], index: 3, kind: input, shape index: {}]   ;;  %s658_s4 = inlined_call_operand.hbm [shape: f32[32,32], index: 4, kind: input, shape index: {}]   ;;  %s659_s5 = inlined_call_operand.vmem [shape: f32[1,32], index: 5, kind: input, shape index: {}]   ;;  %s660_s6 = inlined_call_operand.vmem [shape: f32[1,32], index: 6, kind: input, shape index: {}]   ;;  %s661_s7 = inlined_call_operand.<no memory space> [shape: f32[1,1], index: 7, kind: input, shape index: {}]   ;;  %s662_s8 = inlined_call_operand.vmem [shape: f32[16,1], index: 8, kind: output, shape index: {}]  }
   0x1   :  { %v13_v0 = vstv %s661_s7 }
   0x2   :  { %14 = vst [vmem:[#allocation2] sm:$0x1] %v13_v0 }
   0x3   :  { %15 = vsyncpa [#allocation4], 0 }
   0x4   :  { %16 = vsyncpa [#allocation6], 0 }
   0x5   :  { %17 = vsyncpa [#allocation9], 0  ;;  %s553_s29 = smov [#allocation5]   ;;  %s554_s9 = smov [#allocation3]  }
   0x6   :  { %s37_s30 = sshll.u32 %s553_s29, 4  ;;  %s23_s10 = sshll.u32 %s554_s9, 4  ;;  %s38_s30 = int_to_ptr.vmem [resolvable:$true] %s37_s30  ;;  %s24_s10 = int_to_ptr.vmem [resolvable:$true] %s23_s10 }
   0x7   :  { %s475_s11 = scalar_lea.vmem %s38_s30, 512  ;;  %p480_p1 = scmp.lt.s32.totalorder %s38_s30, %s38_s30 }
   0x8   :  { %p476_p0 = scmp.ne.s32.totalorder %s38_s30, %s475_s11  ;;  %p481_p2 = scmp.lt.s32.totalorder %s475_s11, %s475_s11 }
   0xa   :  { %p482_p3 = por %p481_p2, %p480_p1 }
   0xc   :  { %p483_p4 = pnand %p482_p3, %p476_p0 }
   0xe   :  { %486 = shalt.err (!%p483_p4)
}
   0xf   :  { %s555_s12 = smov 128   ;;  %s556_s13 = smov 8  }
  0x10   :  { %43 = dma.hbm_to_vmem [thread:$0]  %s656_s2, 512, %s38_s30, [#allocation6], %s555_s12, %s555_s12, %s556_s13  }
  0x11   :  { %s495_s15 = scalar_lea.vmem %s24_s10, 256  ;;  %p500_p6 = scmp.lt.s32.totalorder %s24_s10, %s24_s10 }
  0x12   :  { %p496_p5 = scmp.ne.s32.totalorder %s24_s10, %s495_s15  ;;  %p501_p7 = scmp.lt.s32.totalorder %s495_s15, %s495_s15 }
  0x14   :  { %p502_p8 = por %p501_p7, %p500_p6 }
  0x16   :  { %p503_p9 = pnand %p502_p8, %p496_p5 }
  0x18   :  { %506 = shalt.err (!%p503_p9)
}
  0x19   :  { %29 = dma.hbm_to_vmem [thread:$0]  %s654_s0, 256, %s24_s10, [#allocation4], %s555_s12, %s555_s12, %s556_s13  }
  0x1a   :  { %s557_s18 = smov [#allocation7]   ;;  %s558_s20 = smov [#allocation8]  }
  0x1b   :  { %s49_s19 = sshll.u32 %s557_s18, 4  ;;  %s61_s21 = sshll.u32 %s558_s20, 4  ;;  %s50_s19 = int_to_ptr.vmem [resolvable:$true] %s49_s19  ;;  %s62_s21 = int_to_ptr.vmem [resolvable:$true] %s61_s21 }
  0x1c   :  { %s515_s2 = scalar_lea.vmem %s50_s19, 512  ;;  %p520_p11 = scmp.lt.s32.totalorder %s50_s19, %s50_s19 }
  0x1d   :  { %p516_p10 = scmp.ne.s32.totalorder %s50_s19, %s515_s2  ;;  %p521_p12 = scmp.lt.s32.totalorder %s515_s2, %s515_s2 }
  0x1f   :  { %p522_p13 = por %p521_p12, %p520_p11 }
  0x21   :  { %p523_p0 = pnand %p522_p13, %p516_p10 }
  0x23   :  { %526 = shalt.err (!%p523_p0)
}
  0x24   :  { %55 = dma.hbm_to_vmem [thread:$0]  %s657_s3, 512, %s50_s19, [#allocation6], %s555_s12, %s555_s12, %s556_s13  }
  0x25   :  { %s535_s0 = scalar_lea.vmem %s62_s21, 512  ;;  %p540_p2 = scmp.lt.s32.totalorder %s62_s21, %s62_s21 }
  0x26   :  { %p536_p1 = scmp.ne.s32.totalorder %s62_s21, %s535_s0  ;;  %p541_p3 = scmp.lt.s32.totalorder %s535_s0, %s535_s0 }
  0x28   :  { %p542_p4 = por %p541_p3, %p540_p2 }
  0x2a   :  { %p543_p5 = pnand %p542_p4, %p536_p1 }
  0x2c   :  { %546 = shalt.err (!%p543_p5)
}
  0x2d   :  { %67 = dma.hbm_to_vmem [thread:$0]  %s658_s4, 512, %s62_s21, [#allocation9], %s555_s12, %s555_s12, %s556_s13  }
  0x2e   :  { %547 = dma.done.wait [#allocation4], 256  }
  0x2f   :  { %548 = vsyncadd [#allocation4], 4294967040 }
  0x30   :  { %549 = dma.done.wait [#allocation6], 1024  }
  0x31   :  { %550 = vsyncadd [#allocation6], 4294966272 }
  0x32   :  { %551 = dma.done.wait [#allocation9], 512  }
  0x33   :  { %552 = vsyncadd [#allocation9], 4294966784  ;;  %v108_v1 = vld [vmem:[#allocation7 + $0x18] sm:$0xff]  ;;  %v107_v3 = vld [vmem:[#allocation7 + $0x10] sm:$0xff]  ;;  %vm92_vm0 = vcmask 1041408   ;;  %vm97_vm1 = vcmask 1043456  }
  0x34   :  { %v104_v2 = vld [vmem:[#allocation5 + $0x18] sm:$0xff]  ;;  %428 = vmatprep.subr.mxu0 %v108_v1  ;;  %v103_v4 = vld [vmem:[#allocation5 + $0x10] sm:$0xff]  ;;  %v106_v5 = vld [vmem:[#allocation7 + $0x8] sm:$0xff]  ;;  %vm109_vm2 = vcmask 261120   ;;  %vm391_vm3 = vcmask 7168  }
  0x35   :  { %439 = vmatprep.subr.mxu1 %v104_v2  ;;  %429 = vmatpush3.msra.mxu0 %v108_v1  ;;  %v102_v6 = vld [vmem:[#allocation5 + $0x8] sm:$0xff]  ;;  %v105_v9 = vld [vmem:[#allocation7] sm:$0xff]  ;;  %v86_v13 = vld [vmem:[#allocation3] sm:$0xff] }
  0x36   :  { %440 = vmatpush3.msra.mxu1 %v104_v2  ;;  %v88_v7 = vld [vmem:[%s655_s1] sm:$0x3]  ;;  %430 = vmatprep.subr.mxu0 %v107_v3  ;;  %v101_v10 = vld [vmem:[#allocation5] sm:$0xff]  ;;  %v87_v14 = vld [vmem:[#allocation3 + $0x8] sm:$0xff] }
  0x37   :  { %441 = vmatprep.subr.mxu1 %v103_v4  ;;  %v90_v8 = vrot.slane %v88_v7, 6  ;;  %431 = vmatpush3.msra.mxu0 %v107_v3  ;;  %v272_v16 = vld [vmem:[#allocation8 + $0x18] sm:$0xff]  ;;  %v271_v18 = vld [vmem:[#allocation8 + $0x10] sm:$0xff]  ;;  %v270_v19 = vld [vmem:[#allocation8 + $0x8] sm:$0xff] }
  0x38   :  { %442 = vmatpush3.msra.mxu1 %v103_v4  ;;  %432 = vmatprep.subr.mxu0 %v106_v5  ;;  %v269_v20 = vld [vmem:[#allocation8] sm:$0xff]  ;;  %v407_v28 = vld [vmem:[%s659_s5] ss:$0 sm:$0xff] }
  0x39   :  { %443 = vmatprep.subr.mxu1 %v102_v6  ;;  %v93_v11 = vsel %vm92_vm0, %v88_v7, %v90_v8  ;;  %433 = vmatpush3.msra.mxu0 %v106_v5  ;;  %v408_v37 = vld [vmem:[%s660_s6] ss:$0 sm:$0xff] }
  0x3a   :  { %444 = vmatpush3.msra.mxu1 %v102_v6  ;;  %v95_v12 = vrot.slane %v93_v11, 4  ;;  %434 = vmatprep.subr.mxu0 %v105_v9  ;;  %v409_v42 = vld [vmem:[#allocation2] ss:$0 sm:$0xff] }
  0x3b   :  { %445 = vmatprep.subr.mxu1 %v101_v10  ;;  %435 = vmatpush3.msra.mxu0 %v105_v9 }
  0x3c   :  { %v98_v15 = vsel %vm97_vm1, %v93_v11, %v95_v12  ;;  %446 = vmatpush3.msra.mxu1 %v101_v10  ;;  %447 = vmatprep.mubr.msk.f32.mxu1 %vm109_vm2, %v86_v13 }
  0x3d   :  { %436 = vmatprep.mubr.msk.f32.mxu0 %vm109_vm2, %v98_v15  ;;  %v99_v17 = vmul.f32 %v98_v15, %v86_v13  ;;  %448 = vmatmul.mubr.msk.f32.vlgmr.msra.gmra.mxu1 %vm109_vm2, %v87_v14  ;;  %v100_v21 = vmul.f32 %v98_v15, %v87_v14 }
  0x3e   :  { %437 = vmatmul.mubr.msk.f32.vlgmr.msra.gmra.mxu0 %vm109_vm2, %v98_v15  ;;  %450 = vmatprep.subr.mxu0 %v272_v16 }
  0x3f   :  { %458 = vmatprep.mubr.msk.f32.mxu0 %vm109_vm2, %v99_v17  ;;  %451 = vmatpush3.msra.mxu0 %v272_v16 }
  0x40   :  { %452 = vmatprep.subr.mxu0 %v271_v18 }
  0x41   :  { %453 = vmatpush3.msra.mxu0 %v271_v18 }
  0x42   :  { %454 = vmatprep.subr.mxu0 %v270_v19 }
  0x43   :  { %455 = vmatpush3.msra.mxu0 %v270_v19 }
  0x44   :  { %456 = vmatprep.subr.mxu0 %v269_v20 }
  0x45   :  { %457 = vmatpush3.msra.mxu0 %v269_v20 }
  0x46   :  { %459 = vmatmul.mubr.msk.f32.vlgmr.msra.gmra.mxu0 %vm109_vm2, %v100_v21 }
  0xfd   :  { %v449_v23 = vpop.f32.mrf.mxu1 }
  0xfe   :  { %v438_v22 = vpop.f32.mrf.mxu0 }
  0xff   :  { %v260_v25 = vpop.f32.mrf.mxu1  ;;  %v266_v26 = vadd.f32 %v449_v23, %v438_v22 }
 0x100   :  { %v179_v24 = vpop.f32.mrf.mxu0 }
 0x101   :  { %v261_v29 = vadd.f32 %v260_v25, %v179_v24 }
 0x106   :  { %v460_v27 = vpop.f32.mrf.mxu0 }
 0x107   :  { %v355_v30 = vadd.f32 %v460_v27, %v266_v26 }
 0x108   :  { %v345_v31 = vpop.f32.mrf.mxu0 }
 0x109   :  { %v364_v32 = vadd.f32 %v407_v28, %v355_v30  ;;  %v354_v33 = vadd.f32 %v345_v31, %v261_v29 }
 0x10b   :  { %v363_v34 = vadd.f32 %v407_v28, %v354_v33  ;;  %v366_v35 = vmax.f32 %v364_v32, 0.0 }
 0x10d   :  { %v365_v36 = vmax.f32 %v363_v34, 0.0  ;;  %v375_v40 = vmul.f32 %v408_v37, %v366_v35 }
 0x10f   :  { %v374_v38 = vmul.f32 %v408_v37, %v365_v36  ;;  %v379_v41 = vsel %vm109_vm2, %v375_v40, 0.0 }
 0x111   :  { %v376_v39 = vsel %vm109_vm2, %v374_v38, 0.0 }
 0x112   :  { %377 = vadd.xlane.f32.xlu0 %v376_v39 }
 0x116   :  { %380 = vadd.xlane.f32.xlu0 %v379_v41 }
 0x19b   :  { %v378_v43 = vpop.xlane.xlu0 %377 }
 0x19c   :  { %v389_v44 = vadd.f32 %v409_v42, %v378_v43 }
 0x19e   :  { %392 = vst.msk [vmem:[%s662_s8] sm:$0xff] %vm391_vm3, %v389_v44 }
 0x19f   :  { %v381_v45 = vpop.xlane.xlu0 %380 }
 0x1a0   :  { %v390_v46 = vadd.f32 %v409_v42, %v381_v45 }
 0x1a2   :  { %393 = vst.msk [vmem:[%s662_s8 + $0x8] sm:$0xff] %vm391_vm3, %v390_v46 }
 0x1a3   :  { %398 = vsyncpa [#allocation4], 1 }
 0x1a4   :  { %399 = vsyncpa [#allocation6], 1 }
 0x1a5   :  { %400 = vsyncpa [#allocation9], 1 }

</bundles_post_ra>
